<compile_context>
chip_gen: v7x
topology: tpu7x:2x2x1
jax: 0.10.0
libtpu: 0.0.40
codegen_flags: <defaults>
</compile_context>

<pallas_src>
import jax
import jax.numpy as jnp
from jax.experimental import pallas as pl
from jax.experimental.pallas import tpu as pltpu

LANE = 128


def _round_up(n, m):
    return ((n + m - 1) // m) * m


# ----------------------------- Pallas kernel --------------------------------
def cond_beta_vae_kernel(
    xc_ref, eps_ref,
    w1_ref, b1_ref,        # w1: [K1p, 2*Hp]  (fc1  |  c @ W2_c)
    wml_ref, bml_ref,      # wml: [Hp, 2*Lp]  (mu   |  0.5*logvar)
    w2z_ref, b2_ref,       # w2z: [Lp, Hp]
    w3_ref, b3_ref,        # w3 : [Hp, Op]
    recon_ref, ml_ref,
):
    Hp = b1_ref.shape[-1]
    Lp = eps_ref.shape[-1]

    # ---- encode: one wide matmul gives fc1 pre-activation AND c @ W2_c ----
    hh = jnp.dot(xc_ref[...], w1_ref[...], preferred_element_type=jnp.float32)
    h = jnp.maximum(hh[:, :Hp] + b1_ref[...], 0.0)   # relu(fc1([x|c]))
    c2 = hh[:, Hp:]                                  # decoder cond term c @ W2_c

    # ---- fused mu / (0.5*logvar) projection ----
    ml = (
        jnp.dot(h.astype(wml_ref.dtype), wml_ref[...],
                preferred_element_type=jnp.float32)
        + bml_ref[...]
    )
    mu = ml[:, :Lp]
    half_logvar = ml[:, Lp:]                         # 0.5 folded into weights

    # ---- reparameterize: z = mu + exp(0.5*logvar) * eps ----
    std = jnp.exp(half_logvar)                       # EUP
    z = mu + std * eps_ref[...].astype(jnp.float32)

    # ---- decode: recon = fc3(relu(fc2([z|c]))) ----
    h2 = jnp.maximum(
        jnp.dot(z.astype(w2z_ref.dtype), w2z_ref[...],
                preferred_element_type=jnp.float32)
        + c2 + b2_ref[...],
        0.0,
    )
    recon = (
        jnp.dot(h2.astype(w3_ref.dtype), w3_ref[...],
                preferred_element_type=jnp.float32)
        + b3_ref[...]
    )

    recon_ref[...] = recon.astype(recon_ref.dtype)
    ml_ref[...] = ml.astype(ml_ref.dtype)            # packed [mu | 0.5*logvar]


# ------------------------------ wrapper --------------------------------------
def cond_beta_vae_forward(x, c, eps, kp, *, block_b=128):
    """Fused forward pass. Returns (recon, mu, logvar) matching the module."""
    input_dim, hidden_dim, latent_dim, cond_dim = kp["dims"]
    K1p, Hp, Lp, Op = kp["pads"]
    B = x.shape[0]

    # batch tile: multiple of 8 sublanes, capped at block_b; pad batch to fit.
    tb = min(block_b, _round_up(B, 8))
    Bp = _round_up(B, tb)

    wdt = kp["w1"].dtype
    xc = jnp.zeros((Bp, K1p), wdt)
    xc = xc.at[:B, :input_dim].set(x.astype(wdt))
    xc = xc.at[:B, input_dim:input_dim + cond_dim].set(c.astype(wdt))
    eps_p = jnp.zeros((Bp, Lp), wdt).at[:B, :latent_dim].set(eps.astype(wdt))

    operands = (
        xc, eps_p,
        kp["w1"], kp["b1"],
        kp["wml"], kp["bml"],
        kp["w2z"], kp["b2"],
        kp["w3"], kp["b3"],
    )

    grid = (Bp // tb,)

    def batch_spec(width):
        return pl.BlockSpec((tb, width), lambda i: (i, 0))

    def weight_spec(arr):
        # full array, same block every grid step -> stays VMEM resident
        return pl.BlockSpec(arr.shape, lambda i: (0, 0))

    in_specs = [
        batch_spec(K1p), batch_spec(Lp),
        weight_spec(kp["w1"]), weight_spec(kp["b1"]),
        weight_spec(kp["wml"]), weight_spec(kp["bml"]),
        weight_spec(kp["w2z"]), weight_spec(kp["b2"]),
        weight_spec(kp["w3"]), weight_spec(kp["b3"]),
    ]
    out_specs = (
        pl.BlockSpec((tb, Op), lambda i: (i, 0)),
        pl.BlockSpec((tb, 2 * Lp), lambda i: (i, 0)),
    )
    out_shapes = (
        jax.ShapeDtypeStruct((Bp, Op), jnp.float32),       # recon (padded)
        jax.ShapeDtypeStruct((Bp, 2 * Lp), jnp.float32),   # [mu | 0.5*logvar]
    )

    flops = 2 * Bp * (K1p * 2 * Hp + Hp * 2 * Lp + Lp * Hp + Hp * Op)
    bytes_accessed = (
        sum(int(op.size) * op.dtype.itemsize for op in operands)
        + Bp * Op * 4 + Bp * 2 * Lp * 4
    )
    cost = pl.CostEstimate(
        flops=flops, transcendentals=Bp * Lp, bytes_accessed=bytes_accessed
    )

    recon_p, ml_p = pl.pallas_call(
        cond_beta_vae_kernel,
        out_shape=out_shapes,
        grid=grid,
        in_specs=in_specs,
        out_specs=out_specs,
        compiler_params=pltpu.CompilerParams(
            dimension_semantics=("parallel",),
            vmem_limit_bytes=32 * 1024 * 1024,
        ),
        cost_estimate=cost,
    )(*operands)

    recon = recon_p[:B, :input_dim]
    mu = ml_p[:B, :latent_dim]
    logvar = 2.0 * ml_p[:B, Lp:Lp + latent_dim]   # undo the folded 0.5 (off crit path)
    return recon, mu, logvar


# ----------------------- deterministic parameter init ------------------------
def init_params(key, input_dim, hidden_dim, latent_dim, cond_dim):
    """Canonical nn.Linear-style params (pre-transposed for y = x @ W)."""
    keys = jax.random.split(key, 10)

    def lin(kw, kb, fan_in, fan_out):
        bound = 1.0 / jnp.sqrt(fan_in)
        w = jax.random.uniform(kw, (fan_in, fan_out), jnp.float32, -bound, bound)
        b = jax.random.uniform(kb, (fan_out,), jnp.float32, -bound, bound)
        return w, b

    w1, b1 = lin(keys[0], keys[1], input_dim + cond_dim, hidden_dim)
    wmu, bmu = lin(keys[2], keys[3], hidden_dim, latent_dim)
    wlv, blv = lin(keys[4], keys[5], hidden_dim, latent_dim)
    w2, b2 = lin(keys[6], keys[7], latent_dim + cond_dim, hidden_dim)
    w3, b3 = lin(keys[8], keys[9], hidden_dim, input_dim)

    return {"w1": w1, "b1": b1, "wmu": wmu, "bmu": bmu, "wlv": wlv, "blv": blv,
            "w2": w2, "b2": b2, "w3": w3, "b3": b3}


def pack_params(p, dims, dtype=jnp.float32):
    """Pad to 128 lanes, fuse (fc1 | c@W2_c), fuse (mu | 0.5*logvar)."""
    input_dim, hidden_dim, latent_dim, cond_dim = dims
    K1 = input_dim + cond_dim
    K1p, Hp = _round_up(K1, LANE), _round_up(hidden_dim, LANE)
    Lp, Op = _round_up(latent_dim, LANE), _round_up(input_dim, LANE)

    w1 = jnp.zeros((K1p, 2 * Hp), jnp.float32)
    w1 = w1.at[:K1, :hidden_dim].set(p["w1"])
    w1 = w1.at[input_dim:K1, Hp:Hp + hidden_dim].set(p["w2"][latent_dim:])
    b1 = jnp.zeros((1, Hp), jnp.float32).at[0, :hidden_dim].set(p["b1"])

    wml = jnp.zeros((Hp, 2 * Lp), jnp.float32)
    wml = wml.at[:hidden_dim, :latent_dim].set(p["wmu"])
    wml = wml.at[:hidden_dim, Lp:Lp + latent_dim].set(0.5 * p["wlv"])
    bml = jnp.zeros((1, 2 * Lp), jnp.float32)
    bml = bml.at[0, :latent_dim].set(p["bmu"])
    bml = bml.at[0, Lp:Lp + latent_dim].set(0.5 * p["blv"])

    w2z = jnp.zeros((Lp, Hp), jnp.float32).at[:latent_dim, :hidden_dim].set(
        p["w2"][:latent_dim])
    b2 = jnp.zeros((1, Hp), jnp.float32).at[0, :hidden_dim].set(p["b2"])

    w3 = jnp.zeros((Hp, Op), jnp.float32).at[:hidden_dim, :input_dim].set(p["w3"])
    b3 = jnp.zeros((1, Op), jnp.float32).at[0, :input_dim].set(p["b3"])

    return {
        "w1": w1.astype(dtype), "b1": b1,
        "wml": wml.astype(dtype), "bml": bml,
        "w2z": w2z.astype(dtype), "b2": b2,
        "w3": w3.astype(dtype), "b3": b3,
        "dims": dims, "pads": (K1p, Hp, Lp, Op),
    }


# -------------------------- pure-JAX reference --------------------------------
def reference_forward(x, c, eps, p):
    xc = jnp.concatenate([x, c], axis=1)
    h = jax.nn.relu(xc @ p["w1"] + p["b1"])
    mu = h @ p["wmu"] + p["bmu"]
    logvar = h @ p["wlv"] + p["blv"]
    z = mu + jnp.exp(0.5 * logvar) * eps
    zc = jnp.concatenate([z, c], axis=1)
    h2 = jax.nn.relu(zc @ p["w2"] + p["b2"])
    recon = h2 @ p["w3"] + p["b3"]
    return recon, mu, logvar


if __name__ == "__main__":
    # small shapes consistent with the module's MLP forward
    B, INPUT_DIM, HIDDEN_DIM, LATENT_DIM, COND_DIM = 8, 16, 32, 8, 4
    dims = (INPUT_DIM, HIDDEN_DIM, LATENT_DIM, COND_DIM)

    key = jax.random.PRNGKey(0)
    k_param, k_x, k_c, k_eps = jax.random.split(key, 4)

    params = init_params(k_param, *dims)
    x = jax.random.normal(k_x, (B, INPUT_DIM), jnp.float32)
    c = jax.random.normal(k_c, (B, COND_DIM), jnp.float32)
    # torch.randn_like(std) in reparameterize -> explicit noise so the kernel
    # is deterministic and comparable to the reference.
    eps = jax.random.normal(k_eps, (B, LATENT_DIM), jnp.float32)

    # ---- f32 path (bit-faithful to the PyTorch module) ----
    kp_f32 = pack_params(params, dims, dtype=jnp.float32)
    recon, mu, logvar = jax.block_until_ready(
        cond_beta_vae_forward(x, c, eps, kp_f32))

    recon_ref, mu_ref, logvar_ref = reference_forward(x, c, eps, params)
    assert jnp.allclose(recon, recon_ref, atol=1e-5, rtol=1e-5)
    assert jnp.allclose(mu, mu_ref, atol=1e-5, rtol=1e-5)
    assert jnp.allclose(logvar, logvar_ref, atol=1e-5, rtol=1e-5)

    # ---- bf16 MXU path (native high-throughput path on v6e/v7x) ----
    kp_bf16 = pack_params(params, dims, dtype=jnp.bfloat16)
    recon_bf, mu_bf, logvar_bf = jax.block_until_ready(
        cond_beta_vae_forward(x, c, eps, kp_bf16))
    assert bool(jnp.all(jnp.isfinite(recon_bf)))
    assert float(jnp.max(jnp.abs(recon_bf - recon_ref))) < 0.25

    print("KERNEL_OK")
</pallas_src>

<mosaic_0001>
module attributes {stable_mosaic.version = 11 : i64} {
  func.func @cond_beta_vae_kernel(%arg0: i32, %arg1: memref<8x128xf32, #tpu.memory_space<vmem>>, %arg2: memref<8x128xf32, #tpu.memory_space<vmem>>, %arg3: memref<128x256xf32, #tpu.memory_space<vmem>>, %arg4: memref<1x128xf32, #tpu.memory_space<vmem>>, %arg5: memref<128x256xf32, #tpu.memory_space<vmem>>, %arg6: memref<1x256xf32, #tpu.memory_space<vmem>>, %arg7: memref<128x128xf32, #tpu.memory_space<vmem>>, %arg8: memref<1x128xf32, #tpu.memory_space<vmem>>, %arg9: memref<128x128xf32, #tpu.memory_space<vmem>>, %arg10: memref<1x128xf32, #tpu.memory_space<vmem>>, %arg11: memref<8x128xf32, #tpu.memory_space<vmem>>, %arg12: memref<8x256xf32, #tpu.memory_space<vmem>>) attributes {dimension_semantics = [#tpu.dimension_semantics<parallel>], iteration_bounds = array<i64: 1>, scalar_prefetch = 0 : i64, scratch_operands = 0 : i64, tpu.core_type = #tpu.core_type<tc>, window_params = [{transform_indices = @transform_0, window_bounds = array<i64: 8, 128>}, {transform_indices = @transform_1, window_bounds = array<i64: 8, 128>}, {pipeline_mode = #tpu.pipeline_mode<synchronous>, transform_indices = @transform_2, window_bounds = array<i64: 128, 256>}, {pipeline_mode = #tpu.pipeline_mode<synchronous>, transform_indices = @transform_3, window_bounds = array<i64: 1, 128>}, {pipeline_mode = #tpu.pipeline_mode<synchronous>, transform_indices = @transform_4, window_bounds = array<i64: 128, 256>}, {pipeline_mode = #tpu.pipeline_mode<synchronous>, transform_indices = @transform_5, window_bounds = array<i64: 1, 256>}, {pipeline_mode = #tpu.pipeline_mode<synchronous>, transform_indices = @transform_6, window_bounds = array<i64: 128, 128>}, {pipeline_mode = #tpu.pipeline_mode<synchronous>, transform_indices = @transform_7, window_bounds = array<i64: 1, 128>}, {pipeline_mode = #tpu.pipeline_mode<synchronous>, transform_indices = @transform_8, window_bounds = array<i64: 128, 128>}, {pipeline_mode = #tpu.pipeline_mode<synchronous>, transform_indices = @transform_9, window_bounds = array<i64: 1, 128>}, {transform_indices = @transform_10, window_bounds = array<i64: 8, 128>}, {transform_indices = @transform_11, window_bounds = array<i64: 8, 256>}]} {
    %c0 = arith.constant 0 : index
    %c0_0 = arith.constant 0 : index
    %0 = vector.load %arg1[%c0, %c0_0] : memref<8x128xf32, #tpu.memory_space<vmem>>, vector<8x128xf32>
    %c0_1 = arith.constant 0 : index
    %c0_2 = arith.constant 0 : index
    %1 = vector.load %arg3[%c0_1, %c0_2] : memref<128x256xf32, #tpu.memory_space<vmem>>, vector<128x256xf32>
    %cst = arith.constant dense<0.000000e+00> : vector<8x256xf32>
    %2 = tpu.matmul %0, %1, %cst {dimension_numbers = #tpu.dot_dimension_numbers<[1], [0], [0], [1], [0, 0, 1, 1], [], []>} : vector<8x128xf32>, vector<128x256xf32>, vector<8x256xf32> -> vector<8x256xf32>
    %3 = vector.extract_strided_slice %2 {offsets = [0, 0], sizes = [8, 128], strides = [1, 1]} : vector<8x256xf32> to vector<8x128xf32>
    %c0_3 = arith.constant 0 : index
    %c0_4 = arith.constant 0 : index
    %4 = vector.load %arg4[%c0_3, %c0_4] : memref<1x128xf32, #tpu.memory_space<vmem>>, vector<1x128xf32>
    %5 = vector.broadcast %4 : vector<1x128xf32> to vector<8x128xf32>
    %6 = arith.addf %3, %5 : vector<8x128xf32>
    %cst_5 = arith.constant 0.000000e+00 : f32
    %7 = vector.broadcast %cst_5 : f32 to vector<8x128xf32>
    %8 = arith.maximumf %6, %7 : vector<8x128xf32>
    %9 = vector.extract_strided_slice %2 {offsets = [0, 128], sizes = [8, 128], strides = [1, 1]} : vector<8x256xf32> to vector<8x128xf32>
    %c0_6 = arith.constant 0 : index
    %c0_7 = arith.constant 0 : index
    %10 = vector.load %arg5[%c0_6, %c0_7] : memref<128x256xf32, #tpu.memory_space<vmem>>, vector<128x256xf32>
    %cst_8 = arith.constant dense<0.000000e+00> : vector<8x256xf32>
    %11 = tpu.matmul %8, %10, %cst_8 {dimension_numbers = #tpu.dot_dimension_numbers<[1], [0], [0], [1], [0, 0, 1, 1], [], []>} : vector<8x128xf32>, vector<128x256xf32>, vector<8x256xf32> -> vector<8x256xf32>
    %c0_9 = arith.constant 0 : index
    %c0_10 = arith.constant 0 : index
    %12 = vector.load %arg6[%c0_9, %c0_10] : memref<1x256xf32, #tpu.memory_space<vmem>>, vector<1x256xf32>
    %13 = vector.broadcast %12 : vector<1x256xf32> to vector<8x256xf32>
    %14 = arith.addf %11, %13 : vector<8x256xf32>
    %15 = vector.extract_strided_slice %14 {offsets = [0, 0], sizes = [8, 128], strides = [1, 1]} : vector<8x256xf32> to vector<8x128xf32>
    %16 = vector.extract_strided_slice %14 {offsets = [0, 128], sizes = [8, 128], strides = [1, 1]} : vector<8x256xf32> to vector<8x128xf32>
    %17 = math.exp %16 : vector<8x128xf32>
    %c0_11 = arith.constant 0 : index
    %c0_12 = arith.constant 0 : index
    %18 = vector.load %arg2[%c0_11, %c0_12] : memref<8x128xf32, #tpu.memory_space<vmem>>, vector<8x128xf32>
    %19 = arith.mulf %17, %18 : vector<8x128xf32>
    %20 = arith.addf %15, %19 : vector<8x128xf32>
    %c0_13 = arith.constant 0 : index
    %c0_14 = arith.constant 0 : index
    %21 = vector.load %arg7[%c0_13, %c0_14] : memref<128x128xf32, #tpu.memory_space<vmem>>, vector<128x128xf32>
    %cst_15 = arith.constant dense<0.000000e+00> : vector<8x128xf32>
    %22 = tpu.matmul %20, %21, %cst_15 {dimension_numbers = #tpu.dot_dimension_numbers<[1], [0], [0], [1], [0, 0, 1, 1], [], []>} : vector<8x128xf32>, vector<128x128xf32>, vector<8x128xf32> -> vector<8x128xf32>
    %23 = arith.addf %22, %9 : vector<8x128xf32>
    %c0_16 = arith.constant 0 : index
    %c0_17 = arith.constant 0 : index
    %24 = vector.load %arg8[%c0_16, %c0_17] : memref<1x128xf32, #tpu.memory_space<vmem>>, vector<1x128xf32>
    %25 = vector.broadcast %24 : vector<1x128xf32> to vector<8x128xf32>
    %26 = arith.addf %23, %25 : vector<8x128xf32>
    %cst_18 = arith.constant 0.000000e+00 : f32
    %27 = vector.broadcast %cst_18 : f32 to vector<8x128xf32>
    %28 = arith.maximumf %26, %27 : vector<8x128xf32>
    %c0_19 = arith.constant 0 : index
    %c0_20 = arith.constant 0 : index
    %29 = vector.load %arg9[%c0_19, %c0_20] : memref<128x128xf32, #tpu.memory_space<vmem>>, vector<128x128xf32>
    %cst_21 = arith.constant dense<0.000000e+00> : vector<8x128xf32>
    %30 = tpu.matmul %28, %29, %cst_21 {dimension_numbers = #tpu.dot_dimension_numbers<[1], [0], [0], [1], [0, 0, 1, 1], [], []>} : vector<8x128xf32>, vector<128x128xf32>, vector<8x128xf32> -> vector<8x128xf32>
    %c0_22 = arith.constant 0 : index
    %c0_23 = arith.constant 0 : index
    %31 = vector.load %arg10[%c0_22, %c0_23] : memref<1x128xf32, #tpu.memory_space<vmem>>, vector<1x128xf32>
    %32 = vector.broadcast %31 : vector<1x128xf32> to vector<8x128xf32>
    %33 = arith.addf %30, %32 : vector<8x128xf32>
    %c0_24 = arith.constant 0 : index
    %c0_25 = arith.constant 0 : index
    %34 = vector.load %arg11[%c0_24, %c0_25] : memref<8x128xf32, #tpu.memory_space<vmem>>, vector<8x128xf32>
    tpu.vector_store %arg11[%c0_24, %c0_25], %33 {strides = array<i32>} : memref<8x128xf32, #tpu.memory_space<vmem>>, vector<8x128xf32>,
    %c0_26 = arith.constant 0 : index
    %c0_27 = arith.constant 0 : index
    %35 = vector.load %arg12[%c0_26, %c0_27] : memref<8x256xf32, #tpu.memory_space<vmem>>, vector<8x256xf32>
    tpu.vector_store %arg12[%c0_26, %c0_27], %14 {strides = array<i32>} : memref<8x256xf32, #tpu.memory_space<vmem>>, vector<8x256xf32>,
    return
  }
  func.func @transform_0(%arg0: i32) -> (i32, i32) {
    %c0_i32 = arith.constant 0 : i32
    %c0_i32_0 = arith.constant 0 : i32
    return %arg0, %c0_i32 : i32, i32
  }
  func.func @transform_1(%arg0: i32) -> (i32, i32) {
    %c0_i32 = arith.constant 0 : i32
    %c0_i32_0 = arith.constant 0 : i32
    return %arg0, %c0_i32 : i32, i32
  }
  func.func @transform_2(%arg0: i32) -> (i32, i32) {
    %c0_i32 = arith.constant 0 : i32
    %c0_i32_0 = arith.constant 0 : i32
    %c0_i32_1 = arith.constant 0 : i32
    return %c0_i32, %c0_i32_0 : i32, i32
  }
  func.func @transform_3(%arg0: i32) -> (i32, i32) {
    %c0_i32 = arith.constant 0 : i32
    %c0_i32_0 = arith.constant 0 : i32
    %c0_i32_1 = arith.constant 0 : i32
    return %c0_i32, %c0_i32_0 : i32, i32
  }
  func.func @transform_4(%arg0: i32) -> (i32, i32) {
    %c0_i32 = arith.constant 0 : i32
    %c0_i32_0 = arith.constant 0 : i32
    %c0_i32_1 = arith.constant 0 : i32
    return %c0_i32, %c0_i32_0 : i32, i32
  }
  func.func @transform_5(%arg0: i32) -> (i32, i32) {
    %c0_i32 = arith.constant 0 : i32
    %c0_i32_0 = arith.constant 0 : i32
    %c0_i32_1 = arith.constant 0 : i32
    return %c0_i32, %c0_i32_0 : i32, i32
  }
  func.func @transform_6(%arg0: i32) -> (i32, i32) {
    %c0_i32 = arith.constant 0 : i32
    %c0_i32_0 = arith.constant 0 : i32
    %c0_i32_1 = arith.constant 0 : i32
    return %c0_i32, %c0_i32_0 : i32, i32
  }
  func.func @transform_7(%arg0: i32) -> (i32, i32) {
    %c0_i32 = arith.constant 0 : i32
    %c0_i32_0 = arith.constant 0 : i32
    %c0_i32_1 = arith.constant 0 : i32
    return %c0_i32, %c0_i32_0 : i32, i32
  }
  func.func @transform_8(%arg0: i32) -> (i32, i32) {
    %c0_i32 = arith.constant 0 : i32
    %c0_i32_0 = arith.constant 0 : i32
    %c0_i32_1 = arith.constant 0 : i32
    return %c0_i32, %c0_i32_0 : i32, i32
  }
  func.func @transform_9(%arg0: i32) -> (i32, i32) {
    %c0_i32 = arith.constant 0 : i32
    %c0_i32_0 = arith.constant 0 : i32
    %c0_i32_1 = arith.constant 0 : i32
    return %c0_i32, %c0_i32_0 : i32, i32
  }
  func.func @transform_10(%arg0: i32) -> (i32, i32) {
    %c0_i32 = arith.constant 0 : i32
    %c0_i32_0 = arith.constant 0 : i32
    return %arg0, %c0_i32 : i32, i32
  }
  func.func @transform_11(%arg0: i32) -> (i32, i32) {
    %c0_i32 = arith.constant 0 : i32
    %c0_i32_0 = arith.constant 0 : i32
    return %arg0, %c0_i32 : i32, i32
  }
}

</mosaic_0001>

<bundles_post_ra>
// kernel: tpu_custom_call.1
= control target key start
LH: loop header
LB: loop body
LE: loop exit
PB: predicated region body
PF: predicated region fallthrough
CT: control target
= control target key end

     0   :  { %17 = vsyncpa [#allocation3], 0  ;;  %s1209_s0 = inlined_call_operand.hbm [shape: f32[8,128], index: 0, kind: input, shape index: {}]   ;;  %s1210_s1 = inlined_call_operand.hbm [shape: f32[8,128], index: 1, kind: input, shape index: {}]   ;;  %s1211_s2 = inlined_call_operand.hbm [shape: f32[128,256], index: 2, kind: input, shape index: {}]   ;;  %s1212_s3 = inlined_call_operand.vmem [shape: f32[1,128], index: 3, kind: input, shape index: {}]   ;;  %s1213_s4 = inlined_call_operand.hbm [shape: f32[128,256], index: 4, kind: input, shape index: {}]   ;;  %s1214_s5 = inlined_call_operand.vmem [shape: f32[1,256], index: 5, kind: input, shape index: {}]   ;;  %s1215_s6 = inlined_call_operand.hbm [shape: f32[128,128], index: 6, kind: input, shape index: {}]   ;;  %s1216_s7 = inlined_call_operand.vmem [shape: f32[1,128], index: 7, kind: input, shape index: {}]   ;;  %s1217_s8 = inlined_call_operand.hbm [shape: f32[128,128], index: 8, kind: input, shape index: {}]   ;;  %s1218_s9 = inlined_call_operand.vmem [shape: f32[1,128], index: 9, kind: input, shape index: {}]   ;;  %s1219_s10 = inlined_call_operand.hbm [shape: f32[8,128], index: 10, kind: output, shape index: {0}]   ;;  %s1220_s11 = inlined_call_operand.hbm [shape: f32[8,256], index: 11, kind: output, shape index: {1}]  }
   0x1   :  { %18 = vsyncpa [#allocation6], 0 }
   0x2   :  { %19 = vsyncpa [#allocation9], 0 }
   0x3   :  { %20 = vsyncpa [#allocation12], 0 }
   0x4   :  { %21 = vsyncpa [#allocation4], 0 }
   0x5   :  { %22 = vsyncpa [#allocation15], 0  ;;  %s997_s17 = smov [#allocation5]   ;;  %s809_s21 = scalar_lea.hbm %s1210_s1, 128 }
   0x6   :  { %s39_s18 = sshll.u32 %s997_s17, 4  ;;  %p810_p0 = scmp.ne.s32.totalorder %s1210_s1, %s809_s21  ;;  %s40_s18 = int_to_ptr.vmem [resolvable:$true] %s39_s18 }
   0x7   :  { %p813_p1 = scmp.lt.u32.totalorder %s809_s21, %s1210_s1 }
   0x9   :  { %p815_p2 = pnand %p813_p1, %p810_p0 }
   0xb   :  { %818 = shalt.err (!%p815_p2)
}
   0xc   :  { %s819_s26 = scalar_lea.vmem %s40_s18, 128  ;;  %p824_p4 = scmp.lt.s32.totalorder %s40_s18, %s40_s18 }
   0xd   :  { %p820_p3 = scmp.ne.s32.totalorder %s40_s18, %s819_s26  ;;  %p825_p5 = scmp.lt.s32.totalorder %s819_s26, %s819_s26 }
   0xf   :  { %p826_p6 = por %p825_p5, %p824_p4 }
  0x11   :  { %p827_p7 = pnand %p826_p6, %p820_p3 }
  0x13   :  { %830 = shalt.err (!%p827_p7)
}
  0x14   :  { %42 = dma.hbm_to_vmem [thread:$0]  %s1210_s1, 128, %s40_s18, [#allocation6]  }
  0x15   :  { %s998_s29 = smov [#allocation8]   ;;  %s999_s12 = smov [#allocation2]  }
  0x16   :  { %s62_s30 = sshll.u32 %s998_s29, 4  ;;  %s29_s13 = sshll.u32 %s999_s12, 4  ;;  %s63_s30 = int_to_ptr.vmem [resolvable:$true] %s62_s30  ;;  %s30_s13 = int_to_ptr.vmem [resolvable:$true] %s29_s13 }
  0x17   :  { %s831_s16 = scalar_lea.hbm %s1213_s4, 4096 }
  0x18   :  { %p832_p8 = scmp.ne.s32.totalorder %s1213_s4, %s831_s16  ;;  %p835_p9 = scmp.lt.u32.totalorder %s831_s16, %s1213_s4 }
  0x1a   :  { %p837_p10 = pnand %p835_p9, %p832_p8 }
  0x1c   :  { %840 = shalt.err (!%p837_p10)
}
  0x1d   :  { %s841_s1 = scalar_lea.vmem %s63_s30, 4096  ;;  %p846_p12 = scmp.lt.s32.totalorder %s63_s30, %s63_s30 }
  0x1e   :  { %p842_p11 = scmp.ne.s32.totalorder %s63_s30, %s841_s1  ;;  %p847_p13 = scmp.lt.s32.totalorder %s841_s1, %s841_s1 }
  0x20   :  { %p848_p0 = por %p847_p13, %p846_p12 }
  0x22   :  { %p849_p1 = pnand %p848_p0, %p842_p11 }
  0x24   :  { %852 = shalt.err (!%p849_p1)
}
  0x25   :  { %s1000_s18 = smov 256   ;;  %s1001_s22 = smov 16  }
  0x26   :  { %68 = dma.hbm_to_vmem [thread:$0]  %s1213_s4, 4096, %s63_s30, [#allocation9], %s1000_s18, %s1000_s18, %s1001_s22  }
  0x27   :  { %s853_s27 = scalar_lea.hbm %s1209_s0, 128 }
  0x28   :  { %p854_p2 = scmp.ne.s32.totalorder %s1209_s0, %s853_s27  ;;  %p857_p3 = scmp.lt.u32.totalorder %s853_s27, %s1209_s0 }
  0x2a   :  { %p859_p4 = pnand %p857_p3, %p854_p2 }
  0x2c   :  { %862 = shalt.err (!%p859_p4)
}
  0x2d   :  { %s863_s15 = scalar_lea.vmem %s30_s13, 128  ;;  %p868_p6 = scmp.lt.s32.totalorder %s30_s13, %s30_s13 }
  0x2e   :  { %p864_p5 = scmp.ne.s32.totalorder %s30_s13, %s863_s15  ;;  %p869_p7 = scmp.lt.s32.totalorder %s863_s15, %s863_s15 }
  0x30   :  { %p870_p8 = por %p869_p7, %p868_p6 }
  0x32   :  { %p871_p9 = pnand %p870_p8, %p864_p5 }
  0x34   :  { %874 = shalt.err (!%p871_p9)
}
  0x35   :  { %32 = dma.hbm_to_vmem [thread:$0]  %s1209_s0, 128, %s30_s13, [#allocation3]  }
  0x36   :  { %s1002_s16 = smov [#allocation7]   ;;  %s1003_s19 = smov [#allocation10]  }
  0x37   :  { %s48_s17 = sshll.u32 %s1002_s16, 4  ;;  %s76_s20 = sshll.u32 %s1003_s19, 4  ;;  %s49_s17 = int_to_ptr.vmem [resolvable:$true] %s48_s17  ;;  %s77_s20 = int_to_ptr.vmem [resolvable:$true] %s76_s20 }
  0x38   :  { %s875_s23 = scalar_lea.hbm %s1211_s2, 4096 }
  0x39   :  { %p876_p10 = scmp.ne.s32.totalorder %s1211_s2, %s875_s23  ;;  %p879_p11 = scmp.lt.u32.totalorder %s875_s23, %s1211_s2 }
  0x3b   :  { %p881_p12 = pnand %p879_p11, %p876_p10 }
  0x3d   :  { %884 = shalt.err (!%p881_p12)
}
  0x3e   :  { %s885_s0 = scalar_lea.vmem %s49_s17, 4096  ;;  %p890_p0 = scmp.lt.s32.totalorder %s49_s17, %s49_s17 }
  0x3f   :  { %p886_p13 = scmp.ne.s32.totalorder %s49_s17, %s885_s0  ;;  %p891_p1 = scmp.lt.s32.totalorder %s885_s0, %s885_s0 }
  0x41   :  { %p892_p2 = por %p891_p1, %p890_p0 }
  0x43   :  { %p893_p3 = pnand %p892_p2, %p886_p13 }
  0x45   :  { %896 = shalt.err (!%p893_p3)
}
  0x46   :  { %54 = dma.hbm_to_vmem [thread:$0]  %s1211_s2, 4096, %s49_s17, [#allocation6], %s1000_s18, %s1000_s18, %s1001_s22  }
  0x47   :  { %s897_s14 = scalar_lea.hbm %s1215_s6, 2048 }
  0x48   :  { %p898_p4 = scmp.ne.s32.totalorder %s1215_s6, %s897_s14  ;;  %p901_p5 = scmp.lt.u32.totalorder %s897_s14, %s1215_s6 }
  0x4a   :  { %p903_p6 = pnand %p901_p5, %p898_p4 }
  0x4c   :  { %906 = shalt.err (!%p903_p6)
}
  0x4d   :  { %s907_s19 = scalar_lea.vmem %s77_s20, 2048  ;;  %p912_p8 = scmp.lt.s32.totalorder %s77_s20, %s77_s20 }
  0x4e   :  { %p908_p7 = scmp.ne.s32.totalorder %s77_s20, %s907_s19  ;;  %p913_p9 = scmp.lt.s32.totalorder %s907_s19, %s907_s19 }
  0x50   :  { %p914_p10 = por %p913_p9, %p912_p8 }
  0x52   :  { %p915_p11 = pnand %p914_p10, %p908_p7 }
  0x54   :  { %918 = shalt.err (!%p915_p11)
}
  0x55   :  { %s1004_s2 = smov 128   ;;  %s1005_s18 = smov 8  }
  0x56   :  { %82 = dma.hbm_to_vmem [thread:$0]  %s1215_s6, 2048, %s77_s20, [#allocation9], %s1004_s2, %s1004_s2, %s1005_s18  }
  0x57   :  { %s1006_s21 = smov [#allocation11]   ;;  %s919_s25 = scalar_lea.hbm %s1217_s8, 2048 }
  0x58   :  { %s90_s1 = sshll.u32 %s1006_s21, 4  ;;  %p920_p12 = scmp.ne.s32.totalorder %s1217_s8, %s919_s25  ;;  %s91_s1 = int_to_ptr.vmem [resolvable:$true] %s90_s1 }
  0x59   :  { %p923_p13 = scmp.lt.u32.totalorder %s919_s25, %s1217_s8 }
  0x5b   :  { %p925_p0 = pnand %p923_p13, %p920_p12 }
  0x5d   :  { %928 = shalt.err (!%p925_p0)
}
  0x5e   :  { %s929_s28 = scalar_lea.vmem %s91_s1, 2048  ;;  %p934_p2 = scmp.lt.s32.totalorder %s91_s1, %s91_s1 }
  0x5f   :  { %p930_p1 = scmp.ne.s32.totalorder %s91_s1, %s929_s28  ;;  %p935_p3 = scmp.lt.s32.totalorder %s929_s28, %s929_s28 }
  0x61   :  { %p936_p4 = por %p935_p3, %p934_p2 }
  0x63   :  { %p937_p5 = pnand %p936_p4, %p930_p1 }
  0x65   :  { %940 = shalt.err (!%p937_p5)
}
  0x66   :  { %96 = dma.hbm_to_vmem [thread:$0]  %s1217_s8, 2048, %s91_s1, [#allocation12], %s1004_s2, %s1004_s2, %s1005_s18  }
  0x67   :  { %985 = dma.done.wait [#allocation3], 128  }
  0x68   :  { %986 = vsyncadd [#allocation3], 4294967168 }
  0x69   :  { %987 = dma.done.wait [#allocation6], 4224  }
  0x6a   :  { %988 = vsyncadd [#allocation6], 4294963072 }
  0x6b   :  { %989 = dma.done.wait [#allocation9], 6144  }
  0x6c   :  { %990 = vsyncadd [#allocation9], 4294961152 }
  0x6d   :  { %991 = dma.done.wait [#allocation12], 2048  }
  0x6e   :  { %992 = vsyncadd [#allocation12], 4294965248  ;;  %v1007_v0 = vmov 0.0   ;;  %v119_v1 = vld [vmem:[#allocation7 + $0x8] sm:$0xff]  ;;  %v121_v2 = vld [vmem:[#allocation7 + $0x18] sm:$0xff]  ;;  %vm1009_vm0 = vmmov 0  }
  0x6f   :  { %214 = vmatprep.mubr.f32.mxu0 %v1007_v0  ;;  %338 = vmatprep.mubr.f32.mxu1 %v1007_v0  ;;  %v118_v3 = vld [vmem:[#allocation7] sm:$0xff]  ;;  %v680_v4 = vpack.c.bf16 %v121_v2, %v119_v1  ;;  %v120_v5 = vld [vmem:[#allocation7 + $0x10] sm:$0xff]  ;;  %v123_v6 = vld [vmem:[#allocation7 + $0x28] sm:$0xff]  ;;  %s1010_s15 = smov [#allocation14]  }
  0x70   :  { %v125_v7 = vld [vmem:[#allocation7 + $0x38] sm:$0xff]  ;;  %v682_v8 = vpack.c.bf16 %v120_v5, %v118_v3  ;;  %v122_v10 = vld [vmem:[#allocation7 + $0x20] sm:$0xff]  ;;  %v124_v11 = vld [vmem:[#allocation7 + $0x30] sm:$0xff]  ;;  %s557_s4 = sshll.u32 %s1010_s15, 4  ;;  %s558_s4 = int_to_ptr.vmem [resolvable:$true] %s557_s4 }
  0x71   :  { %v684_v9 = vpack.c.bf16 %v125_v7, %v123_v6  ;;  %v127_v12 = vld [vmem:[#allocation7 + $0x48] sm:$0xff]  ;;  %681 = vmatprep.subr.bf16.mxu0 %v680_v4  ;;  %v129_v13 = vld [vmem:[#allocation7 + $0x58] sm:$0xff]  ;;  %v686_v14 = vpack.c.bf16 %v124_v11, %v122_v10  ;;  %v126_v16 = vld [vmem:[#allocation7 + $0x40] sm:$0xff]  ;;  %s941_s30 = scalar_lea.vmem %s558_s4, 256  ;;  %p946_p7 = scmp.lt.s32.totalorder %s558_s4, %s558_s4 }
  0x72   :  { %683 = vmatpush1.bf16.msra.mxu0 %v682_v8  ;;  %v688_v15 = vpack.c.bf16 %v129_v13, %v127_v12  ;;  %v128_v17 = vld [vmem:[#allocation7 + $0x50] sm:$0xff]  ;;  %v131_v18 = vld [vmem:[#allocation7 + $0x68] sm:$0xff]  ;;  %v133_v19 = vld [vmem:[#allocation7 + $0x78] sm:$0xff]  ;;  %p942_p6 = scmp.ne.s32.totalorder %s558_s4, %s941_s30  ;;  %p947_p8 = scmp.lt.s32.totalorder %s941_s30, %s941_s30 }
  0x73   :  { %685 = vmatprep.subr.bf16.mxu0 %v684_v9  ;;  %v690_v20 = vpack.c.bf16 %v128_v17, %v126_v16  ;;  %v692_v21 = vpack.c.bf16 %v133_v19, %v131_v18  ;;  %v130_v22 = vld [vmem:[#allocation7 + $0x60] sm:$0xff]  ;;  %v132_v23 = vld [vmem:[#allocation7 + $0x70] sm:$0xff]  ;;  %v135_v24 = vld [vmem:[#allocation7 + $0x88] sm:$0xff] }
  0x74   :  { %v137_v25 = vld [vmem:[#allocation7 + $0x98] sm:$0xff]  ;;  %v134_v26 = vld [vmem:[#allocation7 + $0x80] sm:$0xff]  ;;  %v136_v27 = vld [vmem:[#allocation7 + $0x90] sm:$0xff]  ;;  %v694_v31 = vpack.c.bf16 %v132_v23, %v130_v22  ;;  %p948_p9 = por %p947_p8, %p946_p7 }
  0x75   :  { %v231_v28 = vld [vmem:[#allocation8 + $0x8] sm:$0xff]  ;;  %v233_v29 = vld [vmem:[#allocation8 + $0x18] sm:$0xff]  ;;  %v230_v30 = vld [vmem:[#allocation8] sm:$0xff]  ;;  %v696_v36 = vpack.c.bf16 %v137_v25, %v135_v24  ;;  %v698_v46 = vpack.c.bf16 %v136_v27, %v134_v26 }
  0x76   :  { %687 = vmatpush1.bf16.msra.mxu0 %v686_v14  ;;  %v712_v32 = vpack.c.bf16 %v233_v29, %v231_v28  ;;  %v232_v33 = vld [vmem:[#allocation8 + $0x10] sm:$0xff]  ;;  %v235_v34 = vld [vmem:[#allocation8 + $0x28] sm:$0xff]  ;;  %v237_v35 = vld [vmem:[#allocation8 + $0x38] sm:$0xff]  ;;  %p949_p10 = pnand %p948_p9, %p942_p6 }
  0x77   :  { %689 = vmatprep.subr.bf16.mxu0 %v688_v15  ;;  %v714_v37 = vpack.c.bf16 %v232_v33, %v230_v30  ;;  %v716_v38 = vpack.c.bf16 %v237_v35, %v235_v34  ;;  %v234_v39 = vld [vmem:[#allocation8 + $0x20] sm:$0xff]  ;;  %v236_v40 = vld [vmem:[#allocation8 + $0x30] sm:$0xff]  ;;  %v239_v41 = vld [vmem:[#allocation8 + $0x48] sm:$0xff] }
  0x78   :  { %v139_v42 = vld [vmem:[#allocation7 + $0xa8] sm:$0xff]  ;;  %v141_v43 = vld [vmem:[#allocation7 + $0xb8] sm:$0xff]  ;;  %713 = vmatprep.subr.bf16.mxu1 %v712_v32  ;;  %v718_v45 = vpack.c.bf16 %v236_v40, %v234_v39  ;;  %v138_v47 = vld [vmem:[#allocation7 + $0xa0] sm:$0xff] }
  0x79   :  { %v241_v44 = vld [vmem:[#allocation8 + $0x58] sm:$0xff]  ;;  %715 = vmatpush1.bf16.msra.mxu1 %v714_v37  ;;  %v238_v49 = vld [vmem:[#allocation8 + $0x40] sm:$0xff]  ;;  %v240_v50 = vld [vmem:[#allocation8 + $0x50] sm:$0xff]  ;;  %v700_v51 = vpack.c.bf16 %v141_v43, %v139_v42 }
  0x7a   :  { %691 = vmatpush1.bf16.msra.mxu0 %v690_v20  ;;  %717 = vmatprep.subr.bf16.mxu1 %v716_v38  ;;  %v720_v48 = vpack.c.bf16 %v241_v44, %v239_v41  ;;  %v140_v52 = vld [vmem:[#allocation7 + $0xb0] sm:$0xff]  ;;  %v243_v53 = vld [vmem:[#allocation8 + $0x68] sm:$0xff]  ;;  %v245_v54 = vld [vmem:[#allocation8 + $0x78] sm:$0xff]  ;;  %v722_v57 = vpack.c.bf16 %v240_v50, %v238_v49  ;;  %v1008_v38 = vmov 0.0|0.0  }
  0x7b   :  { %693 = vmatprep.subr.bf16.mxu0 %v692_v21  ;;  %v143_v55 = vld [vmem:[#allocation7 + $0xc8] sm:$0xff]  ;;  %v145_v56 = vld [vmem:[#allocation7 + $0xd8] sm:$0xff]  ;;  %v702_v58 = vpack.c.bf16 %v140_v52, %v138_v47  ;;  %v142_v59 = vld [vmem:[#allocation7 + $0xc0] sm:$0xff]  ;;  %v724_v60 = vpack.c.bf16 %v245_v54, %v243_v53 }
  0x7c   :  { %v242_v61 = vld [vmem:[#allocation8 + $0x60] sm:$0xff]  ;;  %v244_v62 = vld [vmem:[#allocation8 + $0x70] sm:$0xff]  ;;  %v704_v63 = vpack.c.bf16 %v145_v56, %v143_v55  ;;  %v247_v2 = vld [vmem:[#allocation8 + $0x88] sm:$0xff] }
  0x7d   :  { %719 = vmatpush1.bf16.msra.mxu1 %v718_v45  ;;  %v144_v1 = vld [vmem:[#allocation7 + $0xd0] sm:$0xff]  ;;  %v249_v3 = vld [vmem:[#allocation8 + $0x98] sm:$0xff]  ;;  %v147_v4 = vld [vmem:[#allocation7 + $0xe8] sm:$0xff]  ;;  %v726_v6 = vpack.c.bf16 %v244_v62, %v242_v61 }
  0x7e   :  { %695 = vmatpush1.bf16.msra.mxu0 %v694_v31  ;;  %721 = vmatprep.subr.bf16.mxu1 %v720_v48  ;;  %v149_v5 = vld [vmem:[#allocation7 + $0xf8] sm:$0xff]  ;;  %v706_v7 = vpack.c.bf16 %v144_v1, %v142_v59  ;;  %v146_v8 = vld [vmem:[#allocation7 + $0xe0] sm:$0xff]  ;;  %v728_v9 = vpack.c.bf16 %v249_v3, %v247_v2  ;;  %v248_v11 = vld [vmem:[#allocation8 + $0x90] sm:$0xff] }
  0x7f   :  { %697 = vmatprep.subr.bf16.mxu0 %v696_v36  ;;  %v246_v10 = vld [vmem:[#allocation8 + $0x80] sm:$0xff]  ;;  %v708_v12 = vpack.c.bf16 %v149_v5, %v147_v4  ;;  %v148_v13 = vld [vmem:[#allocation7 + $0xf0] sm:$0xff]  ;;  %v251_v14 = vld [vmem:[#allocation8 + $0xa8] sm:$0xff] }
  0x80   :  { %v253_v15 = vld [vmem:[#allocation8 + $0xb8] sm:$0xff]  ;;  %v730_v16 = vpack.c.bf16 %v248_v11, %v246_v10  ;;  %v710_v17 = vpack.c.bf16 %v148_v13, %v146_v8  ;;  %v250_v19 = vld [vmem:[#allocation8 + $0xa0] sm:$0xff]  ;;  %v252_v20 = vld [vmem:[#allocation8 + $0xb0] sm:$0xff] }
  0x81   :  { %723 = vmatpush1.bf16.msra.mxu1 %v722_v57  ;;  %v732_v18 = vpack.c.bf16 %v253_v15, %v251_v14  ;;  %v255_v21 = vld [vmem:[#allocation8 + $0xc8] sm:$0xff]  ;;  %v257_v22 = vld [vmem:[#allocation8 + $0xd8] sm:$0xff]  ;;  %v734_v23 = vpack.c.bf16 %v252_v20, %v250_v19  ;;  %v117_v24 = vld [vmem:[#allocation2] sm:$0xff]  ;;  %v264_v19 = vlaneseq }
  0x82   :  { %699 = vmatpush1.bf16.msra.mxu0 %v698_v46  ;;  %725 = vmatprep.subr.bf16.mxu1 %v724_v60  ;;  %v736_v25 = vpack.c.bf16 %v257_v22, %v255_v21  ;;  %v254_v26 = vld [vmem:[#allocation8 + $0xc0] sm:$0xff]  ;;  %v256_v27 = vld [vmem:[#allocation8 + $0xd0] sm:$0xff]  ;;  %v259_v29 = vld [vmem:[#allocation8 + $0xe8] sm:$0xff] }
  0x83   :  { %701 = vmatprep.subr.bf16.mxu0 %v700_v51  ;;  %v738_v28 = vpack.c.bf16 %v256_v27, %v254_v26  ;;  %v261_v30 = vld [vmem:[#allocation8 + $0xf8] sm:$0xff]  ;;  %v258_v32 = vld [vmem:[#allocation8 + $0xe0] sm:$0xff]  ;;  %v260_v33 = vld [vmem:[#allocation8 + $0xf0] sm:$0xff]  ;;  %v265_v20 = vshrl.u32 %v264_v19, 7 }
  0x84   :  { %v740_v31 = vpack.c.bf16 %v261_v30, %v259_v29  ;;  %v742_v34 = vpack.c.bf16 %v260_v33, %v258_v32  ;;  %v350_v35 = vld [vmem:[#allocation10] sm:$0xff]  ;;  %v351_v36 = vld [vmem:[#allocation10 + $0x8] sm:$0xff]  ;;  %v352_v37 = vld [vmem:[#allocation10 + $0x10] sm:$0xff] }
  0x85   :  { %727 = vmatpush1.bf16.msra.mxu1 %v726_v6  ;;  %v745_v39 = vpack.c.bf16 %v351_v36, %v350_v35  ;;  %v353_v40 = vld [vmem:[#allocation10 + $0x18] sm:$0xff]  ;;  %v354_v42 = vld [vmem:[#allocation10 + $0x20] sm:$0xff]  ;;  %v355_v43 = vld [vmem:[#allocation10 + $0x28] sm:$0xff]  ;;  %v266_v21 = vsub.s32 0, %v265_v20 }
  0x86   :  { %703 = vmatpush1.bf16.msra.mxu0 %v702_v58  ;;  %729 = vmatprep.subr.bf16.mxu1 %v728_v9  ;;  %v748_v41 = vpack.c.bf16 %v353_v40, %v352_v37  ;;  %v751_v44 = vpack.c.bf16 %v355_v43, %v354_v42  ;;  %v573_v45 = vld [vmem:[%s1212_s3] ss:$0 sm:$0xff]  ;;  %v357_v51 = vld [vmem:[#allocation10 + $0x38] sm:$0xff]  ;;  %v358_v53 = vld [vmem:[#allocation10 + $0x40] sm:$0xff] }
  0x87   :  { %705 = vmatprep.subr.bf16.mxu0 %v704_v63  ;;  %v356_v50 = vld [vmem:[#allocation10 + $0x30] sm:$0xff]  ;;  %v359_v54 = vld [vmem:[#allocation10 + $0x48] sm:$0xff]  ;;  %v361_v57 = vld [vmem:[#allocation10 + $0x58] sm:$0xff] }
  0x88   :  { %v754_v52 = vpack.c.bf16 %v357_v51, %v356_v50  ;;  %v757_v55 = vpack.c.bf16 %v359_v54, %v358_v53  ;;  %v360_v56 = vld [vmem:[#allocation10 + $0x50] sm:$0xff]  ;;  %v362_v59 = vld [vmem:[#allocation10 + $0x60] sm:$0xff]  ;;  %v363_v60 = vld [vmem:[#allocation10 + $0x68] sm:$0xff] }
  0x89   :  { %731 = vmatpush1.bf16.msra.mxu1 %v730_v16  ;;  %v760_v58 = vpack.c.bf16 %v361_v57, %v360_v56  ;;  %v763_v61 = vpack.c.bf16 %v363_v60, %v362_v59  ;;  %v364_v62 = vld [vmem:[#allocation10 + $0x70] sm:$0xff]  ;;  %v365_v63 = vld [vmem:[#allocation10 + $0x78] sm:$0xff]  ;;  %v445_v2 = vld [vmem:[#allocation11] sm:$0xff] }
  0x8a   :  { %707 = vmatpush1.bf16.msra.mxu0 %v706_v7  ;;  %733 = vmatprep.subr.bf16.mxu1 %v732_v18  ;;  %v766_v1 = vpack.c.bf16 %v365_v63, %v364_v62  ;;  %v446_v3 = vld [vmem:[#allocation11 + $0x8] sm:$0xff]  ;;  %v447_v4 = vld [vmem:[#allocation11 + $0x10] sm:$0xff]  ;;  %v448_v6 = vld [vmem:[#allocation11 + $0x18] sm:$0xff] }
  0x8b   :  { %709 = vmatprep.subr.bf16.mxu0 %v708_v12  ;;  %v769_v5 = vpack.c.bf16 %v446_v3, %v445_v2  ;;  %v772_v7 = vpack.c.bf16 %v448_v6, %v447_v4  ;;  %v450_v8 = vld [vmem:[#allocation11 + $0x28] sm:$0xff]  ;;  %v451_v10 = vld [vmem:[#allocation11 + $0x30] sm:$0xff]  ;;  %v452_v11 = vld [vmem:[#allocation11 + $0x38] sm:$0xff] }
  0x8c   :  { %v778_v12 = vpack.c.bf16 %v452_v11, %v451_v10  ;;  %v453_v13 = vld [vmem:[#allocation11 + $0x40] sm:$0xff]  ;;  %v454_v14 = vld [vmem:[#allocation11 + $0x48] sm:$0xff]  ;;  %v455_v16 = vld [vmem:[#allocation11 + $0x50] sm:$0xff] }
  0x8d   :  { %735 = vmatpush1.bf16.msra.mxu1 %v734_v23  ;;  %v781_v15 = vpack.c.bf16 %v454_v14, %v453_v13  ;;  %v262_v22 = vld [vmem:[%s1214_s5] sm:$0x3]  ;;  %v270_v23 = vsub.s32 1, %v265_v20  ;;  %v457_v35 = vld [vmem:[#allocation11 + $0x60] sm:$0xff]  ;;  %v458_v36 = vld [vmem:[#allocation11 + $0x68] sm:$0xff] }
  0x8e   :  { %711 = vmatpush1.bf16.msra.mxu0 %v710_v17  ;;  %737 = vmatprep.subr.bf16.mxu1 %v736_v25  ;;  %v456_v17 = vld [vmem:[#allocation11 + $0x58] sm:$0xff]  ;;  %v787_v37 = vpack.c.bf16 %v458_v36, %v457_v35  ;;  %v574_v43 = vld [vmem:[%s1216_s7] ss:$0 sm:$0xff] }
  0x8f   :  { %744 = vmatprep.subr.bf16.mxu0 %v1008_v38  ;;  %v784_v18 = vpack.c.bf16 %v456_v17, %v455_v16  ;;  %v271_v25 = vrot.slane %v262_v22, %v270_v23  ;;  %v460_v40 = vld [vmem:[#allocation11 + $0x78] sm:$0xff] }
  0x91   :  { %215 = vmatmul.mubr.f32.vlgmr.msra.gmra.mrb[0].mxu0 %v117_v24  ;;  %739 = vmatpush1.bf16.msra.mxu1 %v738_v28  ;;  %v267_v24 = vrot.slane %v262_v22, %v266_v21 }
  0x92   :  { %741 = vmatprep.subr.bf16.mxu1 %v740_v31  ;;  %746 = vmatpush3.bf16.msra.mxu0 %v745_v39  ;;  %v347_v31 = vld [vmem:[#allocation5] sm:$0xff]  ;;  %v459_v39 = vld [vmem:[#allocation11 + $0x70] sm:$0xff] }
  0x93   :  { %747 = vmatprep.subr.bf16.mxu0 %v1008_v38  ;;  %642 = vmatprep.mubr.msk.f32.mxu0 %vm1009_vm0, %v1007_v0 }
  0x95   :  { %743 = vmatpush1.bf16.msra.mxu1 %v742_v34 }
  0x96   :  { %768 = vmatprep.subr.bf16.mxu1 %v1008_v38  ;;  %749 = vmatpush3.bf16.msra.mxu0 %v748_v41  ;;  %v790_v41 = vpack.c.bf16 %v460_v40, %v459_v39 }
  0x97   :  { %750 = vmatprep.subr.bf16.mxu0 %v1008_v38 }
  0x9a   :  { %752 = vmatpush3.bf16.msra.mxu0 %v751_v44 }
  0x9b   :  { %753 = vmatprep.subr.bf16.mxu0 %v1008_v38 }
  0x9e   :  { %755 = vmatpush3.bf16.msra.mxu0 %v754_v52 }
  0x9f   :  { %756 = vmatprep.subr.bf16.mxu0 %v1008_v38 }
  0xa2   :  { %758 = vmatpush3.bf16.msra.mxu0 %v757_v55 }
  0xa3   :  { %759 = vmatprep.subr.bf16.mxu0 %v1008_v38 }
  0xa6   :  { %761 = vmatpush3.bf16.msra.mxu0 %v760_v58 }
  0xa7   :  { %762 = vmatprep.subr.bf16.mxu0 %v1008_v38 }
  0xaa   :  { %764 = vmatpush3.bf16.msra.mxu0 %v763_v61 }
  0xab   :  { %765 = vmatprep.subr.bf16.mxu0 %v1008_v38 }
  0xae   :  { %767 = vmatpush3.bf16.msra.mxu0 %v766_v1 }
 0x164   :  { %v216_v46 = vpop.f32.mrb[0].mxu0 }
 0x165   :  { %v228_v47 = vadd.f32 %v573_v45, %v216_v46  ;;  %v1160_v48 = vpop.f32.mrb[1].mxu0 }
 0x167   :  { %v229_v49 = vmax.f32 %v228_v47, 0.0 }
 0x169   :  { %339 = vmatmul.mubr.f32.vlgmr.msra.gmra.mrb[0].mxu1 %v229_v49 }
 0x16a   :  { %677 = vmatprep.mubr.msk.f32.mxu1 %vm1009_vm0, %v1007_v0  ;;  %770 = vmatpush3.bf16.msra.mxu1 %v769_v5  ;;  %v449_v0 = vld [vmem:[#allocation11 + $0x20] sm:$0xff] }
 0x16b   :  { %771 = vmatprep.subr.bf16.mxu1 %v1008_v38  ;;  %v775_v9 = vpack.c.bf16 %v450_v8, %v449_v0 }
 0x16e   :  { %773 = vmatpush3.bf16.msra.mxu1 %v772_v7 }
 0x16f   :  { %774 = vmatprep.subr.bf16.mxu1 %v1008_v38 }
 0x172   :  { %776 = vmatpush3.bf16.msra.mxu1 %v775_v9 }
 0x173   :  { %777 = vmatprep.subr.bf16.mxu1 %v1008_v38 }
 0x176   :  { %779 = vmatpush3.bf16.msra.mxu1 %v778_v12 }
 0x177   :  { %780 = vmatprep.subr.bf16.mxu1 %v1008_v38 }
 0x17a   :  { %782 = vmatpush3.bf16.msra.mxu1 %v781_v15 }
 0x17b   :  { %783 = vmatprep.subr.bf16.mxu1 %v1008_v38 }
 0x17e   :  { %785 = vmatpush3.bf16.msra.mxu1 %v784_v18 }
 0x17f   :  { %786 = vmatprep.subr.bf16.mxu1 %v1008_v38 }
 0x182   :  { %788 = vmatpush3.bf16.msra.mxu1 %v787_v37 }
 0x183   :  { %789 = vmatprep.subr.bf16.mxu1 %v1008_v38 }
 0x186   :  { %791 = vmatpush3.bf16.msra.mxu1 %v790_v41 }
 0x23c   :  { %v340_v26 = vpop.f32.mrb[0].mxu1 }
 0x23d   :  { %v341_v27 = vadd.f32 %v340_v26, %v267_v24  ;;  %v342_v28 = vpop.f32.mrb[1].mxu1 }
 0x23e   :  { %v343_v29 = vadd.f32 %v342_v28, %v271_v25 }
 0x23f   :  { %539 = vst [vmem:[#allocation14] sm:$0xff] %v341_v27 }
 0x240   :  { %v345_v30 = vmul.f32 1.442695, %v343_v29  ;;  %540 = vst [vmem:[#allocation14 + $0x8] sm:$0xff] %v343_v29 }
 0x242   :  { %807 = vpow2.f32 %v345_v30 }
 0x24c   :  { %v808_v32 = vpop.eup %807 }
 0x24d   :  { %v348_v33 = vmul.f32 %v808_v32, %v347_v31 }
 0x24f   :  { %v349_v34 = vadd.f32 %v348_v33, %v341_v27 }
 0x251   :  { %643 = vmatmul.mubr.f32.vlgmr.msra.gmra.mrb[2].mxu0 %v349_v34 }
 0x324   :  { %v432_v42 = vpop.f32.mrb[2].mxu0 }
 0x325   :  { %v433_v44 = vadd.f32 %v432_v42, %v1160_v48  ;;  %v644_v45 = vpop.f32.mrb[3].mxu0 }
 0x327   :  { %v443_v46 = vadd.f32 %v574_v43, %v433_v44 }
 0x329   :  { %v444_v47 = vmax.f32 %v443_v46, 0.0 }
 0x32b   :  { %678 = vmatmul.mubr.f32.vlgmr.msra.gmra.mrb[2].mxu1 %v444_v47 }
 0x32c   :  { %952 = shalt.err (!%p949_p10)
}
 0x32d   :  { %s953_s7 = scalar_lea.hbm %s1220_s11, 256 }
 0x32e   :  { %p954_p11 = scmp.ne.s32.totalorder %s1220_s11, %s953_s7  ;;  %p957_p12 = scmp.lt.u32.totalorder %s953_s7, %s1220_s11 }
 0x330   :  { %p959_p13 = pnand %p957_p12, %p954_p11 }
 0x332   :  { %962 = shalt.err (!%p959_p13)
}
 0x333   :  { %560 = dma.vmem_to_hbm [thread:$0]  %s558_s4, 256, %s1220_s11, [#allocation15]   ;;  %v575_v38 = vld [vmem:[%s1218_s9] ss:$0 sm:$0xff] }
 0x334   :  { %s1011_s25 = smov [#allocation13]  }
 0x335   :  { %s547_s26 = sshll.u32 %s1011_s25, 4  ;;  %s548_s26 = int_to_ptr.vmem [resolvable:$true] %s547_s26 }
 0x336   :  { %s963_s27 = scalar_lea.vmem %s548_s26, 128  ;;  %p968_p1 = scmp.lt.s32.totalorder %s548_s26, %s548_s26 }
 0x337   :  { %p964_p0 = scmp.ne.s32.totalorder %s548_s26, %s963_s27  ;;  %p969_p2 = scmp.lt.s32.totalorder %s963_s27, %s963_s27 }
 0x339   :  { %p970_p3 = por %p969_p2, %p968_p1 }
 0x33b   :  { %p971_p4 = pnand %p970_p3, %p964_p0 }
 0x3fe   :  { %v534_v48 = vpop.f32.mrb[2].mxu1 }
 0x3ff   :  { %v535_v49 = vadd.f32 %v575_v38, %v534_v48  ;;  %v679_v50 = vpop.f32.mrb[3].mxu1 }
 0x401   :  { %538 = vst [vmem:[#allocation13] sm:$0xff] %v535_v49 }
 0x402   :  { %974 = shalt.err (!%p971_p4)
}
 0x403   :  { %s975_s13 = scalar_lea.hbm %s1219_s10, 128 }
 0x404   :  { %p976_p5 = scmp.ne.s32.totalorder %s1219_s10, %s975_s13  ;;  %p979_p6 = scmp.lt.u32.totalorder %s975_s13, %s1219_s10 }
 0x406   :  { %p981_p7 = pnand %p979_p6, %p976_p5 }
 0x408   :  { %984 = shalt.err (!%p981_p7)
}
 0x409   :  { %550 = dma.vmem_to_hbm [thread:$0]  %s548_s26, 128, %s1219_s10, [#allocation4]  }
 0x40a   :  { %993 = dma.done.wait [#allocation4], 128  }
 0x40b   :  { %994 = vsyncadd [#allocation4], 4294967168 }
 0x40c   :  { %995 = dma.done.wait [#allocation15], 256  }
 0x40d   :  { %996 = vsyncadd [#allocation15], 4294967040 }
 0x40e   :  { %567 = vsyncpa [#allocation3], 1 }
 0x40f   :  { %568 = vsyncpa [#allocation6], 1 }
 0x410   :  { %569 = vsyncpa [#allocation9], 1 }
 0x411   :  { %570 = vsyncpa [#allocation12], 1 }
 0x412   :  { %571 = vsyncpa [#allocation4], 1 }
 0x413   :  { %572 = vsyncpa [#allocation15], 1 }

</bundles_post_ra>
